<compile_context>
chip_gen: v5e
topology: v5e:2x2
jax: 0.10.0
libtpu: 0.0.40
codegen_flags: <defaults>
</compile_context>

<pallas_src>
import functools

import jax
import jax.numpy as jnp
from jax import lax
from jax.experimental import pallas as pl
from jax.experimental.pallas import tpu as pltpu


_BISECT_ITERS = 32  # enough to shrink an int32 float-bit bracket to 1 ulp


# ---------------------------------------------------------------------------
# Kernel: fused (C,F)@(F,TB) similarity + masked multi-focal softmax + NLL rows
#   Layout: classes on sublanes (axis 0), batch rows on lanes (axis 1).
# ---------------------------------------------------------------------------
def _focal_loss_kernel(x_ref, tgt_ref, cls_feat_ref, cls_mask_ref, loss_ref, *, top_percent):
    xb = x_ref[...]                                   # (TB, F) bf16, L2-normalized in glue
    tgt = tgt_ref[...]                                # (1, TB) int32 (-1 for padded rows)
    cls_mask = cls_mask_ref[...]                      # (C, 1)  f32, 1.0 iff class non-empty

    # sim[c, b] = <class_mean_c, x_b> / temp  (1/temp and 1/count folded into cls_feat)
    # bf16 x bf16 on the MXU, f32 accumulation; both operands contracted on their
    # minor dim (NT matmul, no transpose materialized anywhere).
    sim = lax.dot_general(cls_feat_ref[...], xb, (((1,), (1,)), ((), ())),
                          preferred_element_type=jnp.float32)        # (C, TB) f32
    num_c, tb = sim.shape

    exps = jnp.exp(sim) * cls_mask                    # masked_exps
    row_iota = lax.broadcasted_iota(jnp.int32, (num_c, tb), 0)
    is_tgt = row_iota == tgt                          # one_hot(targets); all-false for pads
    # Target-column numerator, reduced once; only `neg` stays live across the loop.
    p_num = jnp.sum(jnp.where(is_tgt, exps, 0.0), axis=0, keepdims=True)     # (1, TB)
    neg = jnp.where(is_tgt, 0.0, exps)                # ori_neg_exps, (C, TB)

    # f32-exact per-row reductions on the XLU (no default-precision MXU dots).
    neg_sum = jnp.sum(neg, axis=0, keepdims=True)                            # (1, TB)
    tgt_cum = top_percent * neg_sum                   # top-percent target, un-normalized
    max_neg = jnp.max(neg, axis=0, keepdims=True)

    # torch: sort(desc) -> cumsum -> argmin(|cumsum - p|) -> take that sorted value.
    # Value-space bisection instead of an O(C) scan: F(t) = sum(neg[neg >= t]) is
    # monotone non-increasing, and for non-negative f32 the bit pattern orders like
    # the value, so bisect the int32 bit bracket.  Invariant: F(lo) >= target > F(hi).
    lo_bits = jnp.zeros((1, tb), jnp.int32)                     # F(0)  = neg_sum >= target
    hi_bits = pltpu.bitcast(max_neg, jnp.int32) + 1             # F(hi) = 0       <  target

    def bisect(_, carry):
        lo, hi = carry
        mid = lo + jnp.right_shift(hi - lo, 1)
        mid_val = pltpu.bitcast(mid, jnp.float32)
        f_mid = jnp.sum(jnp.where(neg >= mid_val, neg, 0.0), axis=0, keepdims=True)
        take = f_mid >= tgt_cum
        return jnp.where(take, mid, lo), jnp.where(take, hi, mid)

    lo_bits, _ = lax.fori_loop(0, _BISECT_ITERS, bisect, (lo_bits, hi_bits))
    lo_val = pltpu.bitcast(lo_bits, jnp.float32)

    # Exact snap: v_hi = largest actual value with F(v_hi) >= target, i.e. the value at
    # the index where the descending cumsum first reaches the target.
    v_hi = jnp.max(jnp.where(neg <= lo_val, neg, 0.0), axis=0, keepdims=True)
    f_hi = jnp.sum(jnp.where(neg >= v_hi, neg, 0.0), axis=0, keepdims=True)   # cumsum at end of run
    g_prev = jnp.sum(jnp.where(neg > v_hi, neg, 0.0), axis=0, keepdims=True)  # cumsum before run

    # Reconstruct the two cumsum candidates adjacent to the crossing and apply the torch
    # argmin tie rule (smaller sorted index, i.e. the lower cumsum, wins on ties).
    safe_v = jnp.where(v_hi > 0.0, v_hi, 1.0)
    r_hi = jnp.maximum(jnp.ceil((tgt_cum - g_prev) / safe_v), 1.0)     # position inside the run
    cum_hi = jnp.minimum(g_prev + r_hi * v_hi, f_hi)                   # first cumsum >= target
    prev_cum = cum_hi - v_hi                                           # cumsum one index earlier
    d_hi = cum_hi - tgt_cum
    d_lo = tgt_cum - prev_cum
    pick_lo = jnp.logical_and(prev_cum > 0.0, d_lo <= d_hi)
    # The loss only needs the sum of kept negatives (>= selected threshold value).
    kept_sum = jnp.where(jnp.logical_and(pick_lo, r_hi <= 1.0), g_prev, f_hi)

    masked_sums = p_num + kept_sum + 1e-6
    p_t = p_num / masked_sums
    loss_ref[...] = -jnp.log(p_t + 1e-6)              # (1, TB) lane-dense; mean taken in glue


# ---------------------------------------------------------------------------
# Glue: per-class aggregation of the memory bank + normalization (tiny ops)
# ---------------------------------------------------------------------------
def _round_up(x, m):
    return ((x + m - 1) // m) * m


def _prepare(results, indexes, features, labels, temp, num_classes):
    # L2-normalize the queries (f32), then bf16 for the MXU (and half the HBM traffic).
    nrm2 = jnp.sum(results * results, axis=1, keepdims=True)
    xb = (results * lax.rsqrt(jnp.maximum(nrm2, 1e-24))).astype(jnp.bfloat16)

    # Fused class aggregation:
    #   sim = ((x @ feats.T) / temp) @ one_hot(labels) / counts  ==  x @ class_mat.T
    onehot = jax.nn.one_hot(labels, num_classes, dtype=jnp.float32)      # (M, C)
    counts = jnp.sum(onehot, axis=0)                                      # (C,)
    cls_mask = (counts > 0).astype(jnp.float32)                           # (C,)
    denom = (jnp.where(counts > 0, counts, 1.0) * temp)[:, None]          # (C, 1)
    class_mat = ((onehot.T @ features) / denom).astype(jnp.bfloat16)      # (C, F)

    targets = labels[indexes].astype(jnp.int32)                           # (B,)
    return xb, class_mat, cls_mask, targets


def cross_hybrid_focal_loss(results, indexes, features, labels, *,
                            temp=0.05, top_percent=0.1, num_classes=None):
    results = jnp.asarray(results, jnp.float32)
    features = jnp.asarray(features, jnp.float32)
    labels = jnp.asarray(labels, jnp.int32)
    indexes = jnp.asarray(indexes, jnp.int32)
    B, F = results.shape

    if num_classes is None:
        # TODO(synk): prefer a static num_classes; this fallback forces a device->host
        # sync and a recompile whenever max(labels) changes.
        num_classes = int(jax.device_get(jnp.max(labels))) + 1
    C = int(num_classes)

    xb, class_mat, cls_mask, targets = _prepare(results, indexes, features, labels, temp, C)

    # Batch tile: multiple of 16 (bf16 sublane packing); pick >= 2 tiles whenever B
    # allows so the "parallel" grid axis can use both TensorCores on v7x.
    if B >= 256:
        TB = 128
    else:
        TB = min(128, max(16, _round_up((B + 1) // 2, 16)))
    Bp = _round_up(B, TB)
    ntiles = Bp // TB
    if Bp != B:
        xb = jnp.pad(xb, ((0, Bp - B), (0, 0)))
        targets = jnp.pad(targets, (0, Bp - B), constant_values=-1)  # pad rows match no class
    tgt2d = targets.reshape(ntiles, TB)          # lane-dense per-tile target rows
    cls_mask2d = cls_mask.reshape(C, 1)

    # Grid-invariant blocks: single-buffer them once they are large enough to matter
    # (halves their VMEM footprint; v7x has only 64 MiB per TensorCore).
    resident_bytes = C * F * 2 + C * 4
    if resident_bytes > (4 << 20):
        cls_feat_spec = pl.BlockSpec((C, F), lambda i: (0, 0), pipeline_mode=pl.Buffered(1))
        cls_mask_spec = pl.BlockSpec((C, 1), lambda i: (0, 0), pipeline_mode=pl.Buffered(1))
    else:
        cls_feat_spec = pl.BlockSpec((C, F), lambda i: (0, 0))
        cls_mask_spec = pl.BlockSpec((C, 1), lambda i: (0, 0))

    # VMEM budget hint: resident class matrix + pipelined tiles + (C, TB) f32 temporaries.
    vmem_bytes = (resident_bytes
                  + 2 * TB * F * 2                       # queries, double-buffered
                  + 4 * TB * 4                           # targets + output blocks
                  + 6 * _round_up(C, 8) * TB * 4         # in-kernel f32 temporaries
                  + (8 << 20))
    vmem_limit = int(min(max(vmem_bytes, 32 << 20), 64 << 20))

    kernel = functools.partial(_focal_loss_kernel, top_percent=float(top_percent))
    row_loss = pl.pallas_call(
        kernel,
        out_shape=jax.ShapeDtypeStruct((ntiles, TB), jnp.float32),
        grid_spec=pltpu.PrefetchScalarGridSpec(
            num_scalar_prefetch=0,
            grid=(ntiles,),
            in_specs=[
                pl.BlockSpec((TB, F), lambda i: (i, 0)),   # queries (bf16)
                pl.BlockSpec((1, TB), lambda i: (i, 0)),   # targets (int32), lane-dense
                cls_feat_spec,                             # class matrix, resident
                cls_mask_spec,                             # class mask, resident
            ],
            out_specs=pl.BlockSpec((1, TB), lambda i: (i, 0)),   # lane-dense row losses
        ),
        compiler_params=pltpu.CompilerParams(
            dimension_semantics=("parallel",),             # megacore-shard batch tiles
            vmem_limit_bytes=vmem_limit),
    )(xb, tgt2d, class_mat, cls_mask2d)

    return jnp.sum(row_loss.reshape(-1)[:B]) / B


class CrossHybridMemoryMultiFocalPercent:
    """JAX/Pallas port of the PyTorch module (forward pass only)."""

    def __init__(self, num_features, num_memory, temp=0.05, momentum=0.2, top_percent=0.1):
        self.num_features = num_features
        self.num_memory = num_memory
        self.temp = temp
        self.momentum = momentum      # only used by HM.backward memory update; unused here
        self.top_percent = top_percent
        # register_buffer('gcn_features', zeros) -- not used by forward()
        self.gcn_features = jnp.zeros((num_memory, num_features), jnp.float32)

    def __call__(self, results, indexes, features, labels, num_classes=None):
        # TODO(synk): batchhard_posfeat / split_label / temp_set optional branches of the
        # PyTorch forward are not implemented (default None/False path only).
        return cross_hybrid_focal_loss(results, indexes, features, labels,
                                       temp=self.temp, top_percent=self.top_percent,
                                       num_classes=num_classes)


# ---------------------------------------------------------------------------
# Pure-JAX (XLA) reference mirroring the kernel math (sort/cumsum/argmin form)
# ---------------------------------------------------------------------------
def _reference_loss(results, indexes, features, labels, *, temp, top_percent, num_classes):
    results = jnp.asarray(results, jnp.float32)
    features = jnp.asarray(features, jnp.float32)
    labels = jnp.asarray(labels, jnp.int32)
    indexes = jnp.asarray(indexes, jnp.int32)
    xb, class_mat, cls_mask, targets = _prepare(results, indexes, features, labels,
                                                temp, num_classes)
    sim = lax.dot_general(xb, class_mat, (((1,), (1,)), ((), ())),
                          preferred_element_type=jnp.float32)
    exps = jnp.exp(sim) * cls_mask[None, :]
    pos = jax.nn.one_hot(targets, num_classes, dtype=jnp.float32)
    pos_exps = exps * pos
    neg_exps = exps * (1.0 - pos)
    neg_sum = neg_exps.sum(axis=1, keepdims=True)
    order = jnp.argsort(-neg_exps, axis=1)                         # stable descending
    sorted_vals = jnp.take_along_axis(neg_exps, order, axis=1)
    csum = jnp.cumsum(sorted_vals, axis=1)
    k = jnp.argmin(jnp.abs(csum - top_percent * neg_sum), axis=1)
    min_vals = jnp.take_along_axis(sorted_vals, k[:, None], axis=1)
    neg_kept = jnp.where(neg_exps < min_vals, 0.0, neg_exps)
    new_exps = pos_exps + neg_kept
    p_t = jnp.sum(new_exps * pos, axis=1) / (new_exps.sum(axis=1) + 1e-6)
    return -jnp.mean(jnp.log(p_t + 1e-6))


if __name__ == "__main__":
    key = jax.random.PRNGKey(0)
    B, F, M, C = 8, 32, 16, 6    # batch, num_features, num_memory, num_classes (static)
    k1, k2, k3, k4 = jax.random.split(key, 4)
    results = jax.random.normal(k1, (B, F), jnp.float32)
    features = jax.random.normal(k2, (M, F), jnp.float32)
    features = features / jnp.linalg.norm(features, axis=1, keepdims=True)
    labels = jax.random.randint(k3, (M,), 0, C, jnp.int32)    # cluster label per memory slot
    indexes = jax.random.randint(k4, (B,), 0, M, jnp.int32)   # memory index per query

    module = CrossHybridMemoryMultiFocalPercent(num_features=F, num_memory=M,
                                                temp=0.05, momentum=0.2, top_percent=0.1)
    loss = module(results, indexes, features, labels, num_classes=C)
    loss = jax.block_until_ready(loss)

    ref = _reference_loss(results, indexes, features, labels,
                          temp=0.05, top_percent=0.1, num_classes=C)
    ref = jax.block_until_ready(ref)

    assert jnp.isfinite(loss), "loss is not finite"
    assert abs(float(loss) - float(ref)) < 1e-2 * max(1.0, abs(float(ref))), (float(loss), float(ref))
    print("KERNEL_OK")
</pallas_src>

<mosaic_0001>
module attributes {stable_mosaic.version = 11 : i64} {
  func.func @_focal_loss_kernel(%arg0: i32, %arg1: memref<16x32xbf16, #tpu.memory_space<vmem>>, %arg2: memref<1x16xi32, #tpu.memory_space<vmem>>, %arg3: memref<6x32xbf16, #tpu.memory_space<vmem>>, %arg4: memref<6x1xf32, #tpu.memory_space<vmem>>, %arg5: memref<1x16xf32, #tpu.memory_space<vmem>>) attributes {dimension_semantics = [#tpu.dimension_semantics<parallel>], iteration_bounds = array<i64: 1>, scalar_prefetch = 0 : i64, scratch_operands = 0 : i64, tpu.core_type = #tpu.core_type<tc>, window_params = [{transform_indices = @transform_0, window_bounds = array<i64: 16, 32>}, {transform_indices = @transform_1, window_bounds = array<i64: 1, 16>}, {pipeline_mode = #tpu.pipeline_mode<synchronous>, transform_indices = @transform_2, window_bounds = array<i64: 6, 32>}, {pipeline_mode = #tpu.pipeline_mode<synchronous>, transform_indices = @transform_3, window_bounds = array<i64: 6, 1>}, {transform_indices = @transform_4, window_bounds = array<i64: 1, 16>}]} {
    %c0 = arith.constant 0 : index
    %c0_0 = arith.constant 0 : index
    %0 = vector.load %arg1[%c0, %c0_0] : memref<16x32xbf16, #tpu.memory_space<vmem>>, vector<16x32xbf16>
    %c0_1 = arith.constant 0 : index
    %c0_2 = arith.constant 0 : index
    %1 = vector.load %arg2[%c0_1, %c0_2] : memref<1x16xi32, #tpu.memory_space<vmem>>, vector<1x16xi32>
    %c0_3 = arith.constant 0 : index
    %c0_4 = arith.constant 0 : index
    %2 = vector.load %arg4[%c0_3, %c0_4] : memref<6x1xf32, #tpu.memory_space<vmem>>, vector<6x1xf32>
    %c0_5 = arith.constant 0 : index
    %c0_6 = arith.constant 0 : index
    %3 = vector.load %arg3[%c0_5, %c0_6] : memref<6x32xbf16, #tpu.memory_space<vmem>>, vector<6x32xbf16>
    %cst = arith.constant dense<0.000000e+00> : vector<6x16xf32>
    %4 = tpu.matmul %3, %0, %cst {dimension_numbers = #tpu.dot_dimension_numbers<[1], [1], [0], [0], [0, 0, 1, 0], [], []>} : vector<6x32xbf16>, vector<16x32xbf16>, vector<6x16xf32> -> vector<6x16xf32>
    %5 = math.exp %4 : vector<6x16xf32>
    %6 = vector.broadcast %2 : vector<6x1xf32> to vector<6x16xf32>
    %7 = arith.mulf %5, %6 : vector<6x16xf32>
    %8 = tpu.iota {dimensions = array<i32: 0>} : vector<6x16xi32>
    %9 = vector.broadcast %1 : vector<1x16xi32> to vector<6x16xi32>
    %10 = arith.cmpi eq, %8, %9 : vector<6x16xi32>
    %cst_7 = arith.constant 0.000000e+00 : f32
    %11 = vector.broadcast %cst_7 : f32 to vector<6x16xf32>
    %12 = arith.select %10, %7, %11 : vector<6x16xi1>, vector<6x16xf32>
    %cst_8 = arith.constant dense<0.000000e+00> : vector<16xf32>
    %13 = vector.multi_reduction <add>, %12, %cst_8 [0] : vector<6x16xf32> to vector<16xf32>
    %14 = vector.shape_cast %13 : vector<16xf32> to vector<1x16xf32>
    %cst_9 = arith.constant 0.000000e+00 : f32
    %15 = vector.broadcast %cst_9 : f32 to vector<6x16xf32>
    %16 = arith.select %10, %15, %7 : vector<6x16xi1>, vector<6x16xf32>
    %cst_10 = arith.constant dense<0.000000e+00> : vector<16xf32>
    %17 = vector.multi_reduction <add>, %16, %cst_10 [0] : vector<6x16xf32> to vector<16xf32>
    %18 = vector.shape_cast %17 : vector<16xf32> to vector<1x16xf32>
    %cst_11 = arith.constant 1.000000e-01 : f32
    %19 = vector.broadcast %cst_11 : f32 to vector<1x16xf32>
    %20 = arith.mulf %19, %18 : vector<1x16xf32>
    %cst_12 = arith.constant dense<0xFF800000> : vector<16xf32>
    %21 = vector.multi_reduction <maximumf>, %16, %cst_12 [0] : vector<6x16xf32> to vector<16xf32>
    %22 = vector.shape_cast %21 : vector<16xf32> to vector<1x16xf32>
    %c0_i32 = arith.constant 0 : i32
    %23 = vector.broadcast %c0_i32 : i32 to vector<1x16xi32>
    %24 = tpu.bitcast %22 : vector<1x16xf32> -> vector<1x16xi32>
    %c1_i32 = arith.constant 1 : i32
    %25 = vector.broadcast %c1_i32 : i32 to vector<1x16xi32>
    %26 = arith.addi %24, %25 : vector<1x16xi32>
    %c0_i32_13 = arith.constant 0 : i32
    %c32_i32 = arith.constant 32 : i32
    %27 = arith.addi %c0_i32_13, %c32_i32 : i32
    %c1_i32_14 = arith.constant 1 : i32
    %28:2 = scf.for %arg6 = %c0_i32_13 to %27 step %c1_i32_14 iter_args(%arg7 = %23, %arg8 = %26) -> (vector<1x16xi32>, vector<1x16xi32>)  : i32 {
      %81 = arith.subi %arg8, %arg7 : vector<1x16xi32>
      %c1_i32_31 = arith.constant 1 : i32
      %82 = vector.broadcast %c1_i32_31 : i32 to vector<1x16xi32>
      %83 = arith.shrsi %81, %82 : vector<1x16xi32>
      %84 = arith.addi %arg7, %83 : vector<1x16xi32>
      %85 = tpu.bitcast %84 : vector<1x16xi32> -> vector<1x16xf32>
      %86 = vector.broadcast %85 : vector<1x16xf32> to vector<6x16xf32>
      %87 = arith.cmpf oge, %16, %86 : vector<6x16xf32>
      %cst_32 = arith.constant 0.000000e+00 : f32
      %88 = vector.broadcast %cst_32 : f32 to vector<6x16xf32>
      %89 = arith.select %87, %16, %88 : vector<6x16xi1>, vector<6x16xf32>
      %cst_33 = arith.constant dense<0.000000e+00> : vector<16xf32>
      %90 = vector.multi_reduction <add>, %89, %cst_33 [0] : vector<6x16xf32> to vector<16xf32>
      %91 = vector.shape_cast %90 : vector<16xf32> to vector<1x16xf32>
      %92 = arith.cmpf oge, %91, %20 : vector<1x16xf32>
      %93 = arith.select %92, %84, %arg7 : vector<1x16xi1>, vector<1x16xi32>
      %94 = arith.select %92, %arg8, %84 : vector<1x16xi1>, vector<1x16xi32>
      scf.yield %93, %94 : vector<1x16xi32>, vector<1x16xi32>
    }
    %29 = tpu.bitcast %28#0 : vector<1x16xi32> -> vector<1x16xf32>
    %30 = vector.broadcast %29 : vector<1x16xf32> to vector<6x16xf32>
    %31 = arith.cmpf ole, %16, %30 : vector<6x16xf32>
    %cst_15 = arith.constant 0.000000e+00 : f32
    %32 = vector.broadcast %cst_15 : f32 to vector<6x16xf32>
    %33 = arith.select %31, %16, %32 : vector<6x16xi1>, vector<6x16xf32>
    %cst_16 = arith.constant dense<0xFF800000> : vector<16xf32>
    %34 = vector.multi_reduction <maximumf>, %33, %cst_16 [0] : vector<6x16xf32> to vector<16xf32>
    %35 = vector.shape_cast %34 : vector<16xf32> to vector<1x16xf32>
    %36 = vector.broadcast %35 : vector<1x16xf32> to vector<6x16xf32>
    %37 = arith.cmpf oge, %16, %36 : vector<6x16xf32>
    %cst_17 = arith.constant 0.000000e+00 : f32
    %38 = vector.broadcast %cst_17 : f32 to vector<6x16xf32>
    %39 = arith.select %37, %16, %38 : vector<6x16xi1>, vector<6x16xf32>
    %cst_18 = arith.constant dense<0.000000e+00> : vector<16xf32>
    %40 = vector.multi_reduction <add>, %39, %cst_18 [0] : vector<6x16xf32> to vector<16xf32>
    %41 = vector.shape_cast %40 : vector<16xf32> to vector<1x16xf32>
    %42 = vector.broadcast %35 : vector<1x16xf32> to vector<6x16xf32>
    %43 = arith.cmpf ogt, %16, %42 : vector<6x16xf32>
    %cst_19 = arith.constant 0.000000e+00 : f32
    %44 = vector.broadcast %cst_19 : f32 to vector<6x16xf32>
    %45 = arith.select %43, %16, %44 : vector<6x16xi1>, vector<6x16xf32>
    %cst_20 = arith.constant dense<0.000000e+00> : vector<16xf32>
    %46 = vector.multi_reduction <add>, %45, %cst_20 [0] : vector<6x16xf32> to vector<16xf32>
    %47 = vector.shape_cast %46 : vector<16xf32> to vector<1x16xf32>
    %cst_21 = arith.constant 0.000000e+00 : f32
    %48 = vector.broadcast %cst_21 : f32 to vector<1x16xf32>
    %49 = arith.cmpf ogt, %35, %48 : vector<1x16xf32>
    %cst_22 = arith.constant 1.000000e+00 : f32
    %50 = vector.broadcast %cst_22 : f32 to vector<1x16xf32>
    %51 = arith.select %49, %35, %50 : vector<1x16xi1>, vector<1x16xf32>
    %52 = arith.subf %20, %47 : vector<1x16xf32>
    %53 = arith.divf %52, %51 : vector<1x16xf32>
    %54 = math.ceil %53 : vector<1x16xf32>
    %cst_23 = arith.constant 1.000000e+00 : f32
    %55 = vector.broadcast %cst_23 : f32 to vector<1x16xf32>
    %56 = arith.maximumf %54, %55 : vector<1x16xf32>
    %57 = arith.mulf %56, %35 : vector<1x16xf32>
    %58 = arith.addf %47, %57 : vector<1x16xf32>
    %59 = arith.minimumf %58, %41 : vector<1x16xf32>
    %60 = arith.subf %59, %35 : vector<1x16xf32>
    %61 = arith.subf %59, %20 : vector<1x16xf32>
    %62 = arith.subf %20, %60 : vector<1x16xf32>
    %cst_24 = arith.constant 0.000000e+00 : f32
    %63 = vector.broadcast %cst_24 : f32 to vector<1x16xf32>
    %64 = arith.cmpf ogt, %60, %63 : vector<1x16xf32>
    %65 = arith.cmpf ole, %62, %61 : vector<1x16xf32>
    %66 = arith.andi %64, %65 : vector<1x16xi1>
    %cst_25 = arith.constant 1.000000e+00 : f32
    %67 = vector.broadcast %cst_25 : f32 to vector<1x16xf32>
    %68 = arith.cmpf ole, %56, %67 : vector<1x16xf32>
    %69 = arith.andi %66, %68 : vector<1x16xi1>
    %70 = arith.select %69, %47, %41 : vector<1x16xi1>, vector<1x16xf32>
    %71 = arith.addf %14, %70 : vector<1x16xf32>
    %cst_26 = arith.constant 9.99999997E-7 : f32
    %72 = vector.broadcast %cst_26 : f32 to vector<1x16xf32>
    %73 = arith.addf %71, %72 : vector<1x16xf32>
    %74 = arith.divf %14, %73 : vector<1x16xf32>
    %cst_27 = arith.constant 9.99999997E-7 : f32
    %75 = vector.broadcast %cst_27 : f32 to vector<1x16xf32>
    %76 = arith.addf %74, %75 : vector<1x16xf32>
    %77 = math.log %76 : vector<1x16xf32>
    %cst_28 = arith.constant 0.000000e+00 : f32
    %78 = vector.broadcast %cst_28 : f32 to vector<1x16xf32>
    %79 = arith.subf %78, %77 : vector<1x16xf32>
    %c0_29 = arith.constant 0 : index
    %c0_30 = arith.constant 0 : index
    %80 = vector.load %arg5[%c0_29, %c0_30] : memref<1x16xf32, #tpu.memory_space<vmem>>, vector<1x16xf32>
    tpu.vector_store %arg5[%c0_29, %c0_30], %79 {strides = array<i32>} : memref<1x16xf32, #tpu.memory_space<vmem>>, vector<1x16xf32>,
    return
  }
  func.func @transform_0(%arg0: i32) -> (i32, i32) {
    %c0_i32 = arith.constant 0 : i32
    %c0_i32_0 = arith.constant 0 : i32
    return %arg0, %c0_i32 : i32, i32
  }
  func.func @transform_1(%arg0: i32) -> (i32, i32) {
    %c0_i32 = arith.constant 0 : i32
    %c0_i32_0 = arith.constant 0 : i32
    return %arg0, %c0_i32 : i32, i32
  }
  func.func @transform_2(%arg0: i32) -> (i32, i32) {
    %c0_i32 = arith.constant 0 : i32
    %c0_i32_0 = arith.constant 0 : i32
    %c0_i32_1 = arith.constant 0 : i32
    return %c0_i32, %c0_i32_0 : i32, i32
  }
  func.func @transform_3(%arg0: i32) -> (i32, i32) {
    %c0_i32 = arith.constant 0 : i32
    %c0_i32_0 = arith.constant 0 : i32
    %c0_i32_1 = arith.constant 0 : i32
    return %c0_i32, %c0_i32_0 : i32, i32
  }
  func.func @transform_4(%arg0: i32) -> (i32, i32) {
    %c0_i32 = arith.constant 0 : i32
    %c0_i32_0 = arith.constant 0 : i32
    return %arg0, %c0_i32 : i32, i32
  }
}

</mosaic_0001>

<bundles_post_ra>
// kernel: tpu_custom_call.1
= control target key start
LH: loop header
LB: loop body
LE: loop exit
PB: predicated region body
PF: predicated region fallthrough
CT: control target
= control target key end

     0   :  { %9 = vsyncpa [#allocation3], 0  ;;  %s428_s0 = inlined_call_operand.vmem [shape: bf16[16,32], index: 0, kind: input, shape index: {}]   ;;  %s429_s1 = inlined_call_operand.vmem [shape: s32[1,16], index: 1, kind: input, shape index: {}]   ;;  %s430_s2 = inlined_call_operand.hbm [shape: bf16[6,32], index: 2, kind: input, shape index: {}]   ;;  %s431_s3 = inlined_call_operand.vmem [shape: f32[6,1], index: 3, kind: input, shape index: {}]   ;;  %s432_s4 = inlined_call_operand.hbm [shape: f32[1,16], index: 4, kind: output, shape index: {}]  }
   0x1   :  { %10 = vsyncpa [#allocation4], 0  ;;  %s20_s17 = sshll.u32 %s430_s2, 4  ;;  %s356_s18 = smov [#allocation2]   ;;  %s21_s17 = int_to_ptr.hbm [resolvable:$true] %s20_s17 }
   0x2   :  { %s22_s19 = sshll.u32 %s356_s18, 4  ;;  %s23_s19 = int_to_ptr.vmem [resolvable:$true] %s22_s19 }
   0x3   :  { %25 = dma.hbm_to_vmem [thread:$0]  %s21_s17, 64, %s23_s19, [#allocation3]  }
   0x4   :  { %340 = dma.done.wait [#allocation3], 64  }
   0x5   :  { %341 = vsyncadd [#allocation3], 4294967232  ;;  %v357_v0 = vmov 0   ;;  %vm43_vm0 = vcmask 261120   ;;  %v242_v1 = vld [vmem:[%s428_s0] sm:$0xff]  ;;  %v71_v7 = vlaneseq  ;;  %vm76_vm2 = vcmask 128000  }
   0x6   :  { %270 = vset.pattern.permute.xlu0 %v357_v0  ;;  %v36_v2 = vld [vmem:[%s431_s3] sm:$0x3f]  ;;  %v48_v3 = vsel %vm43_vm0, %v242_v1, 0  ;;  %v348_v40 = vmov 0   ;;  %s352_s0 = smov 0  }
   0x7   :  { %67 = vperm.xlu0 %270, %v36_v2   ;;  %57 = vmatpush.bf16.xpose.msra.mxu0 %v48_v3  ;;  %v37_v4 = vld [vmem:[#allocation2] sm:$0x7]  ;;  %v72_v8 = vshrl.u32 %v71_v7, 7 }
   0x8   :  { %v271_v9 = vld [vmem:[%s429_s1] ss:$0 sm:$0xff] }
   0x9   :  { %vm74_vm1 = vcmp.eq.s32.totalorder %v72_v8, %v271_v9 }
   0xe   :  { %241 = vmatmul.msk.bf16.vlgmr.msra.gmra.mxu0 %vm43_vm0, %v37_v4 }
  0x79   :  { %v68_v10 = vpop.permute.xlu0 %67 }
  0x8b   :  { %v59_v5 = vpop.f32.mrf.mxu0 }
  0x8c   :  { %v63_v6 = vmul.f32 1.442695, %v59_v5 }
  0x8e   :  { %272 = vpow2.f32 %v63_v6 }
  0x93   :  { %v61_v11 = vpop.f32.mrf.mxu0 }
  0x94   :  { %v273_v12 = vpop.eup %272 }
  0x95   :  { %v70_v13 = vmul.f32 %v273_v12, %v68_v10 }
  0x97   :  { %v75_v14 = vsel %vm74_vm1, %v70_v13, 0.0  ;;  %v396_v15 = vsel %vm74_vm1, 0.0, %v70_v13 }
  0x98   :  { %v77_v16 = vsel %vm76_vm2, %v75_v14, 0.0  ;;  %v85_v17 = vsel %vm76_vm2, %v396_v15, 0.0  ;;  %v93_v18 = vsel %vm76_vm2, %v396_v15, -inf }
  0x99   :  { %v78_v19 = vrot.slane %v77_v16, 4  ;;  %v86_v20 = vrot.slane %v85_v17, 4  ;;  %v94_v21 = vrot.slane %v93_v18, 4 }
  0x9b   :  { %v79_v22 = vadd.f32 %v78_v19, %v77_v16  ;;  %v87_v23 = vadd.f32 %v86_v20, %v85_v17  ;;  %v95_v24 = vmax.f32 %v93_v18, %v94_v21 }
  0x9d   :  { %v80_v25 = vrot.slane %v79_v22, 2  ;;  %v88_v26 = vrot.slane %v87_v23, 2  ;;  %v96_v27 = vrot.slane %v95_v24, 2 }
  0x9f   :  { %v81_v28 = vadd.f32 %v80_v25, %v79_v22  ;;  %v89_v29 = vadd.f32 %v88_v26, %v87_v23  ;;  %v97_v30 = vmax.f32 %v95_v24, %v96_v27 }
  0xa1   :  { %v82_v31 = vrot.slane %v81_v28, 1  ;;  %v90_v32 = vrot.slane %v89_v29, 1  ;;  %v98_v33 = vrot.slane %v97_v30, 1 }
  0xa3   :  { %v403_v34 = vadd.f32 %v82_v31, %v81_v28  ;;  %v91_v35 = vadd.f32 %v90_v32, %v89_v29  ;;  %v99_v36 = vmax.f32 %v97_v30, %v98_v33 }
  0xa5   :  { %v405_v37 = vmul.f32 0.1, %v91_v35  ;;  %v101_v38 = vadd.s32 1, %v99_v36  }
  0xa7   :  { %v344_v39 = vmov %v101_v38  }
  0xa8 LB: > { %v110_v41 = vsub.s32 %v346_v39, %v350_v40  ;;  %s107_s0 = sadd.s32 1, %s354_s0   ;;  %s354_s0 = sphi %s352_s0, %s107_s0   ;;  %v350_v40 = vphi %v348_v40, %v349_v40   ;;  %v346_v39 = vphi %v344_v39, %v125_v39  }
  0xa9   : > { %p104_p0 = scmp.ge.s32.totalorder %s107_s0, 32  }
  0xaa   : > { %v111_v42 = vshra.s32 %v110_v41, 1  ;;  %s358_s1 = smov (%p104_p0), [#allocation5]   ;;  %s216_s27 = sshll.u32 (%p104_p0), %s432_s4, 4  ;;  %s217_s27 = int_to_ptr.hbm [resolvable:$true] %s216_s27 }
  0xab   :  { %s214_s3 = sshll.u32 (%p104_p0), %s358_s1, 4  ;;  %s215_s3 = int_to_ptr.vmem [resolvable:$true] %s214_s3 }
  0xac   : > { %v112_v43 = vadd.s32 %v350_v40, %v111_v42 }
  0xae   : > { %vm114_vm3 = vcmp.ge.f32.partialorder %v396_v15, %v112_v43 }
  0xaf   : > { %v115_v44 = vsel %vm114_vm3, %v396_v15, 0.0 }
  0xb0   : > { %v116_v45 = vsel %vm76_vm2, %v115_v44, 0.0 }
  0xb1   : > { %v117_v46 = vrot.slane %v116_v45, 4 }
  0xb3   : > { %v118_v47 = vadd.f32 %v117_v46, %v116_v45 }
  0xb5   : > { %v119_v48 = vrot.slane %v118_v47, 2 }
  0xb7   : > { %v120_v49 = vadd.f32 %v119_v48, %v118_v47 }
  0xb9   : > { %v121_v50 = vrot.slane %v120_v49, 1 }
  0xbb   : > { %v122_v51 = vadd.f32 %v121_v50, %v120_v49  ;;  %106 = sbr.rel (!%p104_p0) target bundleno = 168 (0xa8), region = 47 }
  0xbd   : > { %vm123_vm4 = vcmp.ge.f32.partialorder %v122_v51, %v405_v37 }
  0xbe   : > { %v124_v52 = vsel %vm123_vm4, %v112_v43, %v350_v40   ;;  %v125_v39 = vsel %vm123_vm4, %v346_v39, %v112_v43  }
  0xbf   : > { %v349_v40 = vmov %v124_v52   ;;  %vm127_vm5 = vcmp.le.f32.partialorder (%p104_p0), %v396_v15, %v124_v52 }
  0xc0   :  { %v128_v53 = vsel %vm127_vm5, %v396_v15, 0.0 }
  0xc1   :  { %v129_v54 = vsel %vm76_vm2, %v128_v53, -inf }
  0xc2   :  { %v130_v55 = vrot.slane %v129_v54, 4 }
  0xc4   :  { %v131_v56 = vmax.f32 %v129_v54, %v130_v55 }
  0xc6   :  { %v132_v57 = vrot.slane %v131_v56, 2 }
  0xc8   :  { %v133_v58 = vmax.f32 %v131_v56, %v132_v57 }
  0xca   :  { %v134_v59 = vrot.slane %v133_v58, 1 }
  0xcc   :  { %v135_v60 = vmax.f32 %v133_v58, %v134_v59 }
  0xce   :  { %vm136_vm6 = vcmp.ge.f32.partialorder %v396_v15, %v135_v60  ;;  %vm145_vm7 = vcmp.gt.f32.partialorder %v396_v15, %v135_v60  ;;  %vm154_vm8 = vcmp.gt.f32.partialorder %v135_v60, 0.0 }
  0xcf   :  { %v137_v61 = vsel %vm136_vm6, %v396_v15, 0.0  ;;  %v146_v62 = vsel %vm145_vm7, %v396_v15, 0.0  ;;  %v155_v63 = vsel %vm154_vm8, %v135_v60, 1.0  ;;  %vm207_vm6 = vcmask 122880  }
  0xd0   :  { %v138_v0 = vsel %vm76_vm2, %v137_v61, 0.0  ;;  %v147_v1 = vsel %vm76_vm2, %v146_v62, 0.0  ;;  %274 = vrcp.f32 %v155_v63  ;;  %vm162_vm9 = vweird.f32 %v155_v63 }
  0xd1   :  { %v148_v2 = vrot.slane %v147_v1, 4  ;;  %v139_v3 = vrot.slane %v138_v0, 4  ;;  %v168_v10 = vand.u32 2147483648, %v155_v63  ;;  %v166_v13 = vand.u32 2147483647, %v155_v63 }
  0xd3   :  { %v149_v4 = vadd.f32 %v148_v2, %v147_v1  ;;  %v140_v7 = vadd.f32 %v139_v3, %v138_v0  ;;  %v169_v17 = vor.u32 1.1754944e-38, %v168_v10  ;;  %vm167_vm12 = vcmp.eq.f32.partialorder %v166_v13, 8.507059e+37 }
  0xd5   :  { %v150_v5 = vrot.slane %v149_v4, 2  ;;  %v141_v14 = vrot.slane %v140_v7, 2 }
  0xd6   :  { %v275_v6 = vpop.eup %274 }
  0xd7   :  { %v151_v8 = vadd.f32 %v150_v5, %v149_v4  ;;  %v158_v9 = vmul.f32 %v275_v6, %v155_v63  ;;  %vm163_vm10 = vweird.f32 %v275_v6  ;;  %v142_v20 = vadd.f32 %v141_v14, %v140_v7 }
  0xd8   :  { %vm164_vm11 = vmor %vm162_vm9, %vm163_vm10 }
  0xd9   :  { %v152_v11 = vrot.slane %v151_v8, 1  ;;  %v159_v12 = vsub.f32 1.0, %v158_v9  ;;  %v143_v24 = vrot.slane %v142_v20, 1 }
  0xdb   :  { %v153_v15 = vadd.f32 %v152_v11, %v151_v8  ;;  %v160_v16 = vmul.f32 %v275_v6, %v159_v12  ;;  %v144_v27 = vadd.f32 %v143_v24, %v142_v20 }
  0xdd   :  { %v156_v18 = vsub.f32 %v405_v37, %v153_v15  ;;  %v161_v19 = vadd.f32 %v275_v6, %v160_v16 }
  0xdf   :  { %v165_v21 = vsel %vm164_vm11, %v275_v6, %v161_v19 }
  0xe0   :  { %v170_v22 = vsel %vm167_vm12, %v169_v17, %v165_v21 }
  0xe1   :  { %v171_v23 = vmul.f32 %v170_v22, %v156_v18 }
  0xe3   :  { %v172_v25 = vceil.f32 %v171_v23 }
  0xe5   :  { %v173_v26 = vmax.f32 %v172_v25, 1.0 }
  0xe7   :  { %v174_v28 = vmul.f32 %v173_v26, %v135_v60  ;;  %vm183_vm14 = vcmp.le.f32.partialorder %v173_v26, 1.0 }
  0xe9   :  { %v175_v29 = vadd.f32 %v174_v28, %v153_v15 }
  0xeb   :  { %v176_v30 = vmin.f32 %v175_v29, %v144_v27 }
  0xed   :  { %v177_v31 = vsub.f32 %v176_v30, %v135_v60  ;;  %v178_v32 = vsub.f32 %v176_v30, %v405_v37 }
  0xef   :  { %v179_v33 = vsub.f32 %v405_v37, %v177_v31  ;;  %vm180_vm13 = vcmp.gt.f32.partialorder %v177_v31, 0.0 }
  0xf1   :  { %vm181_vm15 = vcmp.le.f32.partialorder %v179_v33, %v178_v32 }
  0xf2   :  { %vm182_vm0 = vmand %vm180_vm13, %vm181_vm15 }
  0xf3   :  { %vm184_vm1 = vmand %vm182_vm0, %vm183_vm14 }
  0xf4   :  { %v185_v35 = vsel %vm184_vm1, %v153_v15, %v144_v27 }
  0xf5   :  { %v186_v36 = vadd.f32 %v185_v35, %v403_v34 }
  0xf7   :  { %v187_v38 = vadd.f32 1e-06, %v186_v36 }
  0xf9   :  { %276 = vrcp.f32 %v187_v38  ;;  %v199_v41 = vand.u32 2147483648, %v187_v38  ;;  %vm193_vm2 = vweird.f32 %v187_v38  ;;  %v197_v43 = vand.u32 2147483647, %v187_v38 }
  0xfb   :  { %v200_v37 = vor.u32 1.1754944e-38, %v199_v41  ;;  %vm198_vm5 = vcmp.eq.f32.partialorder %v197_v43, 8.507059e+37 }
  0xff   :  { %v277_v39 = vpop.eup %276 }
 0x100   :  { %v189_v40 = vmul.f32 %v277_v39, %v187_v38  ;;  %vm194_vm3 = vweird.f32 %v277_v39 }
 0x101   :  { %vm195_vm4 = vmor %vm193_vm2, %vm194_vm3 }
 0x102   :  { %v190_v42 = vsub.f32 1.0, %v189_v40 }
 0x104   :  { %v191_v44 = vmul.f32 %v277_v39, %v190_v42 }
 0x106   :  { %v192_v45 = vadd.f32 %v277_v39, %v191_v44 }
 0x108   :  { %v196_v46 = vsel %vm195_vm4, %v277_v39, %v192_v45 }
 0x109   :  { %v201_v47 = vsel %vm198_vm5, %v200_v37, %v196_v46 }
 0x10a   :  { %v202_v48 = vmul.f32 %v201_v47, %v403_v34 }
 0x10c   :  { %v203_v49 = vadd.f32 1e-06, %v202_v48 }
 0x10e   :  { %278 = vlog2.f32 %v203_v49 }
 0x114   :  { %v279_v50 = vpop.eup %278 }
 0x115   :  { %v205_v51 = vmul.f32 0.6931472, %v279_v50 }
 0x117   :  { %v206_v52 = vsub.f32 0.0, %v205_v51 }
 0x119   :  { %208 = vst.msk [vmem:[#allocation5] sm:$0x1] %vm207_vm6, %v206_v52 }
 0x11a   :  { %219 = dma.vmem_to_hbm [thread:$0]  %s215_s3, 16, %s217_s27, [#allocation4]  }
 0x11b   :  { %342 = dma.done.wait [#allocation4], 16  }
 0x11c   :  { %343 = vsyncadd [#allocation4], 4294967280 }
 0x11d   :  { %224 = vsyncpa [#allocation3], 1 }
 0x11e   :  { %225 = vsyncpa [#allocation4], 1 }

</bundles_post_ra>
